<compile_context>
chip_gen: v7x
topology: tpu7x:2x2x1
jax: 0.10.0
libtpu: 0.0.40
codegen_flags: <defaults>
</compile_context>

<pallas_src>
import functools
import math

import jax
import jax.numpy as jnp
from jax.experimental import pallas as pl
from jax.experimental.pallas import tpu as pltpu


_KIND_CLEAR = 0   # no element of the (tq, tk) block is masked
_KIND_MIXED = 1   # some elements masked -> mask data needed
_KIND_FULL = 2    # every element masked -> scores are -1e9, mask data unused


def _pick_tile(size, candidates):
    """Largest candidate that evenly divides `size`, else the full size."""
    for c in candidates:
        if size % c == 0:
            return c
    return size


def _exp_dtype():
    """bf16 exp on chips with a bf16 EUP (v6e/v7x); f32 elsewhere (v5e and older)."""
    try:
        kind = jax.devices()[0].device_kind.lower()
    except Exception:
        return jnp.float32
    if "v6" in kind or "v7" in kind:
        return jnp.bfloat16
    return jnp.float32


# ----------------------------------------------------------------------------
# Flash path (large S): online softmax over kv blocks.
# ----------------------------------------------------------------------------
def _flash_sdpa_kernel(kind_ref, mblk_ref, q_ref, k_ref, v_ref, mask_ref,
                       o_ref, m_sc, l_sc, acc_sc, *, exp_dtype):
    b, qi, kv = pl.program_id(0), pl.program_id(1), pl.program_id(2)
    nq, nk = pl.num_programs(1), pl.num_programs(2)
    kind = kind_ref[(b * nq + qi) * nk + kv]

    @pl.when(kv == 0)
    def _init():
        m_sc[...] = jnp.full_like(m_sc, -jnp.inf)
        l_sc[...] = jnp.zeros_like(l_sc)
        acc_sc[...] = jnp.zeros_like(acc_sc)

    # q is pre-scaled by 1/sqrt(d_k) and already bf16; contract the last dims so
    # no explicit k transpose is needed before the MXU. f32 accumulation.
    s = jax.lax.dot_general(
        q_ref[0], k_ref[0], dimension_numbers=(((1,), (1,)), ((), ())),
        preferred_element_type=jnp.float32)                     # (tq, tk) f32

    # masked_fill_(attn_mask, -1e9):
    #   CLEAR blocks: predicate is all-False -> mask VMEM contents never read
    #                 (its DMA is redirected by the index_map, may be stale).
    #   FULL blocks : every score becomes -1e9 without reading mask data.
    is_full = kind == _KIND_FULL
    is_mixed = kind == _KIND_MIXED
    masked = jnp.logical_or(is_full,
                            jnp.logical_and(is_mixed, mask_ref[0] != 0))
    s = jnp.where(masked, jnp.float32(-1e9), s)

    # Online softmax update; statistics and accumulator stay f32.
    m_prev = m_sc[...]
    m_new = jnp.maximum(m_prev, jnp.max(s, axis=-1, keepdims=True))
    alpha = jnp.exp(m_prev - m_new)
    p = jnp.exp((s - m_new).astype(exp_dtype))
    l_sc[...] = alpha * l_sc[...] + jnp.sum(
        p.astype(jnp.float32), axis=-1, keepdims=True)
    acc_sc[...] = alpha * acc_sc[...] + jnp.dot(
        p.astype(jnp.bfloat16), v_ref[0], preferred_element_type=jnp.float32)
    m_sc[...] = m_new

    @pl.when(kv == nk - 1)
    def _finalize():
        inv_l = pl.reciprocal(l_sc[...], approx=False)
        o_ref[0] = (acc_sc[...] * inv_l).astype(o_ref.dtype)


def _flash_path(qs, kb, vb, mask_i8, out_dtype, exp_dtype):
    BH, S, D = qs.shape
    tq = _pick_tile(S, (1024, 512, 256, 128))
    tk = _pick_tile(S, (512, 256, 128))
    nq, nk = S // tq, S // tk

    # Per-(bh, q-block, kv-block) mask summary, scalar-prefetched to SMEM.
    blk = (mask_i8 != 0).reshape(BH, nq, tq, nk, tk)
    any_m = jnp.any(blk, axis=(2, 4))
    all_m = jnp.all(blk, axis=(2, 4))
    kind = jnp.where(all_m, _KIND_FULL,
                     jnp.where(any_m, _KIND_MIXED, _KIND_CLEAR)).astype(jnp.int32)
    # Mask block index to fetch at each kv step: the current block when MIXED,
    # otherwise hold the previous MIXED block so the pipeline skips the refetch.
    ki_idx = jnp.arange(nk, dtype=jnp.int32)[None, None, :]
    cand = jnp.where(kind == _KIND_MIXED, ki_idx, jnp.int32(-1))
    mblk = jnp.maximum(jax.lax.cummax(cand, axis=2), 0).astype(jnp.int32)

    kind_flat = kind.reshape(-1)
    mblk_flat = mblk.reshape(-1)

    def q_map(b, qi, ki, kind_ref, mblk_ref):
        return (b, qi, 0)

    def kv_map(b, qi, ki, kind_ref, mblk_ref):
        return (b, ki, 0)

    def mask_map(b, qi, ki, kind_ref, mblk_ref):
        return (b, qi, mblk_ref[(b * nq + qi) * nk + ki])

    def out_map(b, qi, ki, kind_ref, mblk_ref):
        return (b, qi, 0)

    out_bytes = jnp.dtype(out_dtype).itemsize
    cost = pl.CostEstimate(
        flops=4 * BH * S * S * D,
        transcendentals=BH * S * S,
        bytes_accessed=(BH * S * D * 2              # q (read once per bh)
                        + 2 * nq * BH * S * D * 2   # k, v (re-streamed per q block)
                        + BH * S * S                # mask upper bound (int8)
                        + BH * S * D * out_bytes))  # output

    kernel = functools.partial(_flash_sdpa_kernel, exp_dtype=exp_dtype)

    return pl.pallas_call(
        kernel,
        out_shape=jax.ShapeDtypeStruct((BH, S, D), out_dtype),
        grid_spec=pltpu.PrefetchScalarGridSpec(
            num_scalar_prefetch=2,
            grid=(BH, nq, nk),
            in_specs=[
                pl.BlockSpec((1, tq, D), q_map),
                pl.BlockSpec((1, tk, D), kv_map),
                pl.BlockSpec((1, tk, D), kv_map),
                pl.BlockSpec((1, tq, tk), mask_map),
            ],
            out_specs=pl.BlockSpec((1, tq, D), out_map),
            scratch_shapes=[
                pltpu.VMEM((tq, 1), jnp.float32),    # running max
                pltpu.VMEM((tq, 1), jnp.float32),    # running softmax denominator
                pltpu.VMEM((tq, D), jnp.float32),    # un-normalized accumulator
            ],
        ),
        compiler_params=pltpu.CompilerParams(
            dimension_semantics=("parallel", "parallel", "arbitrary"),
            vmem_limit_bytes=48 * 1024 * 1024),
        cost_estimate=cost,
    )(kind_flat, mblk_flat, qs, kb, vb, mask_i8)


# ----------------------------------------------------------------------------
# Small-S path: several heads per grid step, whole-S softmax in one shot.
# ----------------------------------------------------------------------------
def _batched_sdpa_kernel(q_ref, k_ref, v_ref, mask_ref, o_ref, *, exp_dtype):
    s = jnp.einsum("bqd,bkd->bqk", q_ref[...], k_ref[...],
                   preferred_element_type=jnp.float32)
    s = jnp.where(mask_ref[...] != 0, jnp.float32(-1e9), s)
    m = jnp.max(s, axis=-1, keepdims=True)
    p = jnp.exp((s - m).astype(exp_dtype))
    l = jnp.sum(p.astype(jnp.float32), axis=-1, keepdims=True)
    pv = jnp.einsum("bqk,bkd->bqd", p.astype(jnp.bfloat16), v_ref[...],
                    preferred_element_type=jnp.float32)
    o_ref[...] = (pv * pl.reciprocal(l, approx=False)).astype(o_ref.dtype)


def _small_s_path(qs, kb, vb, mask_i8, out_dtype, exp_dtype):
    BH, S, D = qs.shape
    bblk = _pick_tile(BH, (16, 8, 4, 2, 1))
    out_bytes = jnp.dtype(out_dtype).itemsize
    cost = pl.CostEstimate(
        flops=4 * BH * S * S * D,
        transcendentals=BH * S * S,
        bytes_accessed=3 * BH * S * D * 2 + BH * S * S + BH * S * D * out_bytes)
    kernel = functools.partial(_batched_sdpa_kernel, exp_dtype=exp_dtype)
    return pl.pallas_call(
        kernel,
        out_shape=jax.ShapeDtypeStruct((BH, S, D), out_dtype),
        grid_spec=pltpu.PrefetchScalarGridSpec(
            num_scalar_prefetch=0,
            grid=(BH // bblk,),
            in_specs=[
                pl.BlockSpec((bblk, S, D), lambda i: (i, 0, 0)),
                pl.BlockSpec((bblk, S, D), lambda i: (i, 0, 0)),
                pl.BlockSpec((bblk, S, D), lambda i: (i, 0, 0)),
                pl.BlockSpec((bblk, S, S), lambda i: (i, 0, 0)),
            ],
            out_specs=pl.BlockSpec((bblk, S, D), lambda i: (i, 0, 0)),
        ),
        compiler_params=pltpu.CompilerParams(
            dimension_semantics=("parallel",),
            vmem_limit_bytes=48 * 1024 * 1024),
        cost_estimate=cost,
    )(qs, kb, vb, mask_i8)


# ----------------------------------------------------------------------------
# Wrapper / dispatch.
# ----------------------------------------------------------------------------
def _sdpa_3d(q, k, v, attn_mask, small_s_threshold):
    BH, S, D = q.shape
    assert k.shape == (BH, S, D) and v.shape == (BH, S, D)
    assert attn_mask.shape == (BH, S, S)
    out_dtype = q.dtype
    exp_dtype = _exp_dtype()
    scale = 1.0 / math.sqrt(D)

    # bf16 MXU operands; 1/sqrt(d_k) folded into the (single HBM pass) q cast.
    qs = (q.astype(jnp.float32) * scale).astype(jnp.bfloat16)
    kb = k.astype(jnp.bfloat16)
    vb = v.astype(jnp.bfloat16)
    mask_i8 = (attn_mask != 0).astype(jnp.int8)

    if S <= small_s_threshold:
        return _small_s_path(qs, kb, vb, mask_i8, out_dtype, exp_dtype)
    return _flash_path(qs, kb, vb, mask_i8, out_dtype, exp_dtype)


def scaled_dot_product_attention(q, k, v, attn_mask, *, small_s_threshold=256):
    """Pallas TPU ScaledDotProductAttention.

    q, k, v: [B, H, S, d_k] or [B*H, S, d_k]; attn_mask broadcastable to
    [B, H, S, S] (or exactly [B*H, S, S]); nonzero/True = masked.
    Returns the same layout/dtype as q (compute is bf16-MXU, f32 accumulation).
    """
    if q.ndim == 4:
        B, H, S, D = q.shape
        mask4 = jnp.broadcast_to(attn_mask, (B, H, S, S))
        out = _sdpa_3d(q.reshape(B * H, S, D), k.reshape(B * H, S, D),
                       v.reshape(B * H, S, D), mask4.reshape(B * H, S, S),
                       small_s_threshold)
        return out.reshape(B, H, S, D)
    return _sdpa_3d(q, k, v, attn_mask, small_s_threshold)


def _reference(q, k, v, attn_mask):
    d_k = q.shape[-1]
    s = jnp.einsum("...qd,...kd->...qk", q.astype(jnp.float32),
                   k.astype(jnp.float32)) / math.sqrt(d_k)
    s = jnp.where(attn_mask != 0, -1e9, s)
    w = jax.nn.softmax(s, axis=-1)
    return jnp.einsum("...qk,...kd->...qd", w, v.astype(jnp.float32))


if __name__ == "__main__":
    key = jax.random.PRNGKey(0)

    # --- Test 1: module-consistent small shape (batch=2, heads=4, seq=8, d_k=32);
    #             exercises the batched small-S path.
    batch, n_heads, seq, d_k = 2, 4, 8, 32
    k1, k2, k3, k4, key = jax.random.split(key, 5)
    q = jax.random.normal(k1, (batch, n_heads, seq, d_k), dtype=jnp.float32)
    kk = jax.random.normal(k2, (batch, n_heads, seq, d_k), dtype=jnp.float32)
    vv = jax.random.normal(k3, (batch, n_heads, seq, d_k), dtype=jnp.float32)
    attn_mask = jax.random.bernoulli(k4, p=0.3, shape=(batch, n_heads, seq, seq))
    attn_mask = attn_mask.at[..., 0].set(False)   # keep >=1 unmasked key per row

    out = jax.block_until_ready(scaled_dot_product_attention(q, kk, vv, attn_mask))
    ref = _reference(q, kk, vv, attn_mask)
    assert out.shape == (batch, n_heads, seq, d_k)
    err = float(jnp.max(jnp.abs(out.astype(jnp.float32) - ref)))
    assert err < 3e-2, f"small-S path max abs err = {err}"

    # --- Test 2: flash (tiled online-softmax) path with a padding-style mask
    #             producing clear / mixed / fully-masked kv blocks.
    BH2, S2, D2 = 4, 1024, 64
    k1, k2, k3, key = jax.random.split(key, 4)
    q2 = jax.random.normal(k1, (BH2, S2, D2), dtype=jnp.float32)
    k2_ = jax.random.normal(k2, (BH2, S2, D2), dtype=jnp.float32)
    v2 = jax.random.normal(k3, (BH2, S2, D2), dtype=jnp.float32)
    lens = jnp.array([300, 800, 1024, 100], dtype=jnp.int32)
    key_pos = jnp.arange(S2, dtype=jnp.int32)
    mask2 = jnp.broadcast_to((key_pos[None, :] >= lens[:, None])[:, None, :],
                             (BH2, S2, S2))

    out2 = jax.block_until_ready(scaled_dot_product_attention(q2, k2_, v2, mask2))
    ref2 = _reference(q2, k2_, v2, mask2)
    assert out2.shape == (BH2, S2, D2)
    err2 = float(jnp.max(jnp.abs(out2.astype(jnp.float32) - ref2)))
    assert err2 < 3e-2, f"flash path max abs err = {err2}"

    print("KERNEL_OK")
</pallas_src>

<mosaic_0001>
module attributes {stable_mosaic.version = 11 : i64} {
  func.func @_batched_sdpa_kernel(%arg0: i32, %arg1: memref<8x8x32xbf16, #tpu.memory_space<vmem>>, %arg2: memref<8x8x32xbf16, #tpu.memory_space<vmem>>, %arg3: memref<8x8x32xbf16, #tpu.memory_space<vmem>>, %arg4: memref<8x8x8xi8, #tpu.memory_space<vmem>>, %arg5: memref<8x8x32xf32, #tpu.memory_space<vmem>>) attributes {dimension_semantics = [#tpu.dimension_semantics<parallel>], iteration_bounds = array<i64: 1>, scalar_prefetch = 0 : i64, scratch_operands = 0 : i64, tpu.core_type = #tpu.core_type<tc>, window_params = [{transform_indices = @transform_0, window_bounds = array<i64: 8, 8, 32>}, {transform_indices = @transform_1, window_bounds = array<i64: 8, 8, 32>}, {transform_indices = @transform_2, window_bounds = array<i64: 8, 8, 32>}, {transform_indices = @transform_3, window_bounds = array<i64: 8, 8, 8>}, {transform_indices = @transform_4, window_bounds = array<i64: 8, 8, 32>}]} {
    %c0 = arith.constant 0 : index
    %c0_0 = arith.constant 0 : index
    %c0_1 = arith.constant 0 : index
    %0 = vector.load %arg1[%c0, %c0_0, %c0_1] : memref<8x8x32xbf16, #tpu.memory_space<vmem>>, vector<8x8x32xbf16>
    %c0_2 = arith.constant 0 : index
    %c0_3 = arith.constant 0 : index
    %c0_4 = arith.constant 0 : index
    %1 = vector.load %arg2[%c0_2, %c0_3, %c0_4] : memref<8x8x32xbf16, #tpu.memory_space<vmem>>, vector<8x8x32xbf16>
    "tpu.trace_start"() <{level = 10 : i32, message = "bqd,bkd->bqk"}> : () -> ()
    %cst = arith.constant dense<0.000000e+00> : vector<8x8x8xf32>
    %2 = tpu.matmul %0, %1, %cst {dimension_numbers = #tpu.dot_dimension_numbers<[2], [2], [1], [1], [0, 0, 0, 1, 1, 1], [0], [0]>} : vector<8x8x32xbf16>, vector<8x8x32xbf16>, vector<8x8x8xf32> -> vector<8x8x8xf32>
    "tpu.trace_stop"() : () -> ()
    %c0_5 = arith.constant 0 : index
    %c0_6 = arith.constant 0 : index
    %c0_7 = arith.constant 0 : index
    %3 = vector.load %arg4[%c0_5, %c0_6, %c0_7] : memref<8x8x8xi8, #tpu.memory_space<vmem>>, vector<8x8x8xi8>
    %c0_i8 = arith.constant 0 : i8
    %4 = vector.broadcast %c0_i8 : i8 to vector<8x8x8xi8>
    %5 = arith.cmpi ne, %3, %4 : vector<8x8x8xi8>
    %cst_8 = arith.constant -1.000000e+09 : f32
    %6 = vector.broadcast %cst_8 : f32 to vector<8x8x8xf32>
    %7 = arith.select %5, %6, %2 : vector<8x8x8xi1>, vector<8x8x8xf32>
    %cst_9 = arith.constant dense<0xFF800000> : vector<8x8xf32>
    %8 = vector.multi_reduction <maximumf>, %7, %cst_9 [2] : vector<8x8x8xf32> to vector<8x8xf32>
    %9 = vector.shape_cast %8 : vector<8x8xf32> to vector<8x8x1xf32>
    %10 = vector.broadcast %9 : vector<8x8x1xf32> to vector<8x8x8xf32>
    %11 = arith.subf %7, %10 : vector<8x8x8xf32>
    %12 = math.exp %11 : vector<8x8x8xf32>
    %cst_10 = arith.constant dense<0.000000e+00> : vector<8x8xf32>
    %13 = vector.multi_reduction <add>, %12, %cst_10 [2] : vector<8x8x8xf32> to vector<8x8xf32>
    %14 = vector.shape_cast %13 : vector<8x8xf32> to vector<8x8x1xf32>
    %15 = arith.truncf %12 : vector<8x8x8xf32> to vector<8x8x8xbf16>
    %c0_11 = arith.constant 0 : index
    %c0_12 = arith.constant 0 : index
    %c0_13 = arith.constant 0 : index
    %16 = vector.load %arg3[%c0_11, %c0_12, %c0_13] : memref<8x8x32xbf16, #tpu.memory_space<vmem>>, vector<8x8x32xbf16>
    "tpu.trace_start"() <{level = 10 : i32, message = "bqk,bkd->bqd"}> : () -> ()
    %cst_14 = arith.constant dense<0.000000e+00> : vector<8x8x32xf32>
    %17 = tpu.matmul %15, %16, %cst_14 {dimension_numbers = #tpu.dot_dimension_numbers<[2], [1], [1], [2], [0, 0, 0, 1, 1, 2], [0], [0]>} : vector<8x8x8xbf16>, vector<8x8x32xbf16>, vector<8x8x32xf32> -> vector<8x8x32xf32>
    "tpu.trace_stop"() : () -> ()
    %18 = tpu.reciprocal %14 : vector<8x8x1xf32> -> vector<8x8x1xf32>
    %19 = vector.broadcast %18 : vector<8x8x1xf32> to vector<8x8x32xf32>
    %20 = arith.mulf %17, %19 : vector<8x8x32xf32>
    %c0_15 = arith.constant 0 : index
    %c0_16 = arith.constant 0 : index
    %c0_17 = arith.constant 0 : index
    %21 = vector.load %arg5[%c0_15, %c0_16, %c0_17] : memref<8x8x32xf32, #tpu.memory_space<vmem>>, vector<8x8x32xf32>
    tpu.vector_store %arg5[%c0_15, %c0_16, %c0_17], %20 {strides = array<i32>} : memref<8x8x32xf32, #tpu.memory_space<vmem>>, vector<8x8x32xf32>,
    return
  }
  func.func @transform_0(%arg0: i32) -> (i32, i32, i32) {
    %c0_i32 = arith.constant 0 : i32
    %c0_i32_0 = arith.constant 0 : i32
    %c0_i32_1 = arith.constant 0 : i32
    return %arg0, %c0_i32, %c0_i32_0 : i32, i32, i32
  }
  func.func @transform_1(%arg0: i32) -> (i32, i32, i32) {
    %c0_i32 = arith.constant 0 : i32
    %c0_i32_0 = arith.constant 0 : i32
    %c0_i32_1 = arith.constant 0 : i32
    return %arg0, %c0_i32, %c0_i32_0 : i32, i32, i32
  }
  func.func @transform_2(%arg0: i32) -> (i32, i32, i32) {
    %c0_i32 = arith.constant 0 : i32
    %c0_i32_0 = arith.constant 0 : i32
    %c0_i32_1 = arith.constant 0 : i32
    return %arg0, %c0_i32, %c0_i32_0 : i32, i32, i32
  }
  func.func @transform_3(%arg0: i32) -> (i32, i32, i32) {
    %c0_i32 = arith.constant 0 : i32
    %c0_i32_0 = arith.constant 0 : i32
    %c0_i32_1 = arith.constant 0 : i32
    return %arg0, %c0_i32, %c0_i32_0 : i32, i32, i32
  }
  func.func @transform_4(%arg0: i32) -> (i32, i32, i32) {
    %c0_i32 = arith.constant 0 : i32
    %c0_i32_0 = arith.constant 0 : i32
    %c0_i32_1 = arith.constant 0 : i32
    return %arg0, %c0_i32, %c0_i32_0 : i32, i32, i32
  }
}

</mosaic_0001>

<bundles_post_ra>
// kernel: tpu_custom_call.1
= control target key start
LH: loop header
LB: loop body
LE: loop exit
PB: predicated region body
PF: predicated region fallthrough
CT: control target
= control target key end

     0   :  { %9 = vsyncpa [#allocation3], 0  ;;  %s1576_s0 = inlined_call_operand.hbm [shape: bf16[8,8,32], index: 0, kind: input, shape index: {}]   ;;  %s1577_s1 = inlined_call_operand.hbm [shape: bf16[8,8,32], index: 1, kind: input, shape index: {}]   ;;  %s1578_s2 = inlined_call_operand.hbm [shape: bf16[8,8,32], index: 2, kind: input, shape index: {}]   ;;  %s1579_s3 = inlined_call_operand.hbm [shape: s8[8,8,8], index: 3, kind: input, shape index: {}]   ;;  %s1580_s4 = inlined_call_operand.hbm [shape: f32[8,8,32], index: 4, kind: output, shape index: {}]  }
   0x1   :  { %10 = vsyncpa [#allocation6], 0 }
   0x2   :  { %11 = vsyncpa [#allocation9], 0 }
   0x3   :  { %12 = vsyncpa [#allocation4], 0  ;;  %s1318_s15 = smov [#allocation5]   ;;  %s1319_s17 = smov [#allocation2]  }
   0x4   :  { %s30_s16 = sshll.u32 %s1318_s15, 4  ;;  %s18_s18 = sshll.u32 %s1319_s17, 4  ;;  %s31_s16 = int_to_ptr.vmem [resolvable:$true] %s30_s16  ;;  %s1357_s18 = int_to_ptr.vmem [resolvable:$true] %s18_s18 }
   0x5   :  { %s1200_s21 = scalar_lea.hbm %s1577_s1, 512 }
   0x6   :  { %p1201_p0 = scmp.ne.s32.totalorder %s1577_s1, %s1200_s21  ;;  %p1204_p1 = scmp.lt.u32.totalorder %s1200_s21, %s1577_s1 }
   0x8   :  { %p1206_p2 = pnand %p1204_p1, %p1201_p0 }
   0xa   :  { %1209 = shalt.err (!%p1206_p2)
}
   0xb   :  { %s1210_s26 = scalar_lea.vmem %s31_s16, 512  ;;  %p1215_p4 = scmp.lt.s32.totalorder %s31_s16, %s31_s16 }
   0xc   :  { %p1211_p3 = scmp.ne.s32.totalorder %s31_s16, %s1210_s26  ;;  %p1216_p5 = scmp.lt.s32.totalorder %s1210_s26, %s1210_s26 }
   0xe   :  { %p1217_p6 = por %p1216_p5, %p1215_p4 }
  0x10   :  { %p1218_p7 = pnand %p1217_p6, %p1211_p3 }
  0x12   :  { %1221 = shalt.err (!%p1218_p7)
}
  0x13   :  { %s1320_s27 = smov 64   ;;  %s1321_s28 = smov 4  }
  0x14   :  { %36 = dma.hbm_to_vmem [thread:$0]  %s1577_s1, 512, %s31_s16, [#allocation6], %s1320_s27, %s1320_s27, %s1321_s28  }
  0x15   :  { %s1222_s7 = scalar_lea.hbm %s1576_s0, 512 }
  0x16   :  { %p1223_p8 = scmp.ne.s32.totalorder %s1576_s0, %s1222_s7  ;;  %p1226_p9 = scmp.lt.u32.totalorder %s1222_s7, %s1576_s0 }
  0x18   :  { %p1228_p10 = pnand %p1226_p9, %p1223_p8 }
  0x1a   :  { %1231 = shalt.err (!%p1228_p10)
}
  0x1b   :  { %s1232_s12 = scalar_lea.vmem %s1357_s18, 512  ;;  %p1237_p12 = scmp.lt.s32.totalorder %s1357_s18, %s1357_s18 }
  0x1c   :  { %p1233_p11 = scmp.ne.s32.totalorder %s1357_s18, %s1232_s12  ;;  %p1238_p13 = scmp.lt.s32.totalorder %s1232_s12, %s1232_s12 }
  0x1e   :  { %p1239_p0 = por %p1238_p13, %p1237_p12 }
  0x20   :  { %p1240_p1 = pnand %p1239_p0, %p1233_p11 }
  0x22   :  { %1243 = shalt.err (!%p1240_p1)
}
  0x23   :  { %24 = dma.hbm_to_vmem [thread:$0]  %s1576_s0, 512, %s1357_s18, [#allocation3], %s1320_s27, %s1320_s27, %s1321_s28  }
  0x24   :  { %s1322_s14 = smov [#allocation7]   ;;  %s1323_s16 = smov [#allocation8]  }
  0x25   :  { %s42_s15 = sshll.u32 %s1322_s14, 4  ;;  %s54_s17 = sshll.u32 %s1323_s16, 4  ;;  %s43_s15 = int_to_ptr.vmem [resolvable:$true] %s42_s15  ;;  %s1394_s17 = int_to_ptr.vmem [resolvable:$true] %s54_s17 }
  0x26   :  { %s1244_s21 = scalar_lea.hbm %s1578_s2, 512 }
  0x27   :  { %p1245_p2 = scmp.ne.s32.totalorder %s1578_s2, %s1244_s21  ;;  %p1248_p3 = scmp.lt.u32.totalorder %s1244_s21, %s1578_s2 }
  0x29   :  { %p1250_p4 = pnand %p1248_p3, %p1245_p2 }
  0x2b   :  { %1253 = shalt.err (!%p1250_p4)
}
  0x2c   :  { %s1254_s0 = scalar_lea.vmem %s43_s15, 512  ;;  %p1259_p6 = scmp.lt.s32.totalorder %s43_s15, %s43_s15 }
  0x2d   :  { %p1255_p5 = scmp.ne.s32.totalorder %s43_s15, %s1254_s0  ;;  %p1260_p7 = scmp.lt.s32.totalorder %s1254_s0, %s1254_s0 }
  0x2f   :  { %p1261_p8 = por %p1260_p7, %p1259_p6 }
  0x31   :  { %p1262_p9 = pnand %p1261_p8, %p1255_p5 }
  0x33   :  { %1265 = shalt.err (!%p1262_p9)
}
  0x34   :  { %48 = dma.hbm_to_vmem [thread:$0]  %s1578_s2, 512, %s43_s15, [#allocation6], %s1320_s27, %s1320_s27, %s1321_s28  }
  0x35   :  { %s1266_s5 = scalar_lea.hbm %s1579_s3, 256 }
  0x36   :  { %p1267_p10 = scmp.ne.s32.totalorder %s1579_s3, %s1266_s5  ;;  %p1270_p11 = scmp.lt.u32.totalorder %s1266_s5, %s1579_s3 }
  0x38   :  { %p1272_p12 = pnand %p1270_p11, %p1267_p10 }
  0x3a   :  { %1275 = shalt.err (!%p1272_p12)
}
  0x3b   :  { %s1276_s10 = scalar_lea.vmem %s1394_s17, 256  ;;  %p1281_p0 = scmp.lt.s32.totalorder %s1394_s17, %s1394_s17 }
  0x3c   :  { %p1277_p13 = scmp.ne.s32.totalorder %s1394_s17, %s1276_s10  ;;  %p1282_p1 = scmp.lt.s32.totalorder %s1276_s10, %s1276_s10 }
  0x3e   :  { %p1283_p2 = por %p1282_p1, %p1281_p0 }
  0x40   :  { %p1284_p3 = pnand %p1283_p2, %p1277_p13 }
  0x42   :  { %1287 = shalt.err (!%p1284_p3)
}
  0x43   :  { %s1324_s2 = smov 32   ;;  %s1325_s27 = smov 2  }
  0x44   :  { %60 = dma.hbm_to_vmem [thread:$0]  %s1579_s3, 256, %s1394_s17, [#allocation9], %s1324_s2, %s1324_s2, %s1325_s27  }
  0x45   :  { %1310 = dma.done.wait [#allocation3], 512  }
  0x46   :  { %1311 = vsyncadd [#allocation3], 4294966784 }
  0x47   :  { %1312 = dma.done.wait [#allocation6], 1024  }
  0x48   :  { %1313 = vsyncadd [#allocation6], 4294966272 }
  0x49   :  { %1314 = dma.done.wait [#allocation9], 256  }
  0x4a   :  { %1315 = vsyncadd [#allocation9], 4294967040  ;;  %v1326_v0 = vmov 0.0   ;;  %vm1327_vm0 = vmmov 0   ;;  %vm92_vm1 = vcmask 261120   ;;  %v1328_v27 = vmov 0  }
  0x4b   :  { %1058 = vmatprep.subr.bf16.mxu0 %v1326_v0  ;;  %1064 = vmatprep.subr.bf16.mxu1 %v1326_v0  ;;  %v84_v1 = vld [vmem:[#allocation5] sm:$0xf]  ;;  %v85_v2 = vld [vmem:[#allocation5 + $0x4] sm:$0xf]  ;;  %v86_v5 = vld [vmem:[#allocation5 + $0x8] sm:$0xf] }
  0x4c   :  { %1060 = vmatprep.mubr.msk.bf16.mxu0 %vm1327_vm0, %v1326_v0  ;;  %1066 = vmatprep.mubr.msk.bf16.mxu1 %vm1327_vm0, %v1326_v0  ;;  %v97_v3 = vsel %vm92_vm1, %v84_v1, 0  ;;  %v143_v4 = vsel %vm92_vm1, %v85_v2, 0  ;;  %v87_v6 = vld [vmem:[#allocation5 + $0xc] sm:$0xf]  ;;  %v76_v7 = vld [vmem:[#allocation2] sm:$0xf] }
  0x4d   :  { %1059 = vmatpush3.bf16.xpose.msra.mxu0 %v97_v3  ;;  %1065 = vmatpush3.bf16.xpose.msra.mxu1 %v143_v4  ;;  %v77_v8 = vld [vmem:[#allocation2 + $0x4] sm:$0xf]  ;;  %v189_v9 = vsel %vm92_vm1, %v86_v5, 0  ;;  %v235_v10 = vsel %vm92_vm1, %v87_v6, 0  ;;  %v88_v11 = vld [vmem:[#allocation5 + $0x10] sm:$0xf] }
  0x4e   :  { %1070 = vmatprep.subr.bf16.mxu0 %v1326_v0  ;;  %1076 = vmatprep.subr.bf16.mxu1 %v1326_v0  ;;  %v89_v12 = vld [vmem:[#allocation5 + $0x14] sm:$0xf]  ;;  %v78_v13 = vld [vmem:[#allocation2 + $0x8] sm:$0xf]  ;;  %v79_v14 = vld [vmem:[#allocation2 + $0xc] sm:$0xf] }
  0x4f   :  { %v281_v15 = vsel %vm92_vm1, %v88_v11, 0  ;;  %v327_v16 = vsel %vm92_vm1, %v89_v12, 0  ;;  %v90_v17 = vld [vmem:[#allocation5 + $0x18] sm:$0xf]  ;;  %v91_v18 = vld [vmem:[#allocation5 + $0x1c] sm:$0xf] }
  0x50   :  { %v80_v19 = vld [vmem:[#allocation2 + $0x10] sm:$0xf]  ;;  %v81_v20 = vld [vmem:[#allocation2 + $0x14] sm:$0xf]  ;;  %v373_v21 = vsel %vm92_vm1, %v90_v17, 0  ;;  %v419_v22 = vsel %vm92_vm1, %v91_v18, 0 }
  0x51   :  { %v82_v23 = vld [vmem:[#allocation2 + $0x18] sm:$0xf]  ;;  %v83_v24 = vld [vmem:[#allocation2 + $0x1c] sm:$0xf]  ;;  %v461_v25 = vld [vmem:[#allocation8] sm:$0x3] }
  0x52   :  { %v462_v26 = vld [vmem:[#allocation8 + $0x2] sm:$0x3]  ;;  %vm469_vm2 = vnez %v461_v25  ;;  %v463_v30 = vld [vmem:[#allocation8 + $0x4] sm:$0x3]  ;;  %v464_v31 = vld [vmem:[#allocation8 + $0x6] sm:$0x3] }
  0x53   :  { %vm470_vm3 = vnez %v462_v26  ;;  %v477_v28 = vsel %vm469_vm2, 16843009, %v1328_v27  ;;  %vm471_vm4 = vnez %v463_v30  ;;  %vm472_vm5 = vnez %v464_v31  ;;  %v465_v38 = vld [vmem:[#allocation8 + $0x8] sm:$0x3]  ;;  %v466_v39 = vld [vmem:[#allocation8 + $0xa] sm:$0x3] }
  0x54   :  { %1061 = vmatmul.mubr.msk.bf16.vlgmr.msra.gmra.mrb[0].mxu0 %vm92_vm1, %v76_v7  ;;  %1067 = vmatmul.mubr.msk.bf16.vlgmr.msra.gmra.mrb[0].mxu1 %vm92_vm1, %v77_v8  ;;  %v478_v29 = vsel %vm470_vm3, 16843009, %v1328_v27  ;;  %v485_v32 = vunpack.c.0.s8 %v477_v28  ;;  %vm509_vm8 = vcmask 64512   ;;  %v479_v34 = vsel %vm471_vm4, 16843009, %v1328_v27  ;;  %s1329_s3 = smov [#allocation10]  }
  0x55   :  { %1071 = vmatpush3.bf16.xpose.msra.mxu0 %v189_v9  ;;  %1077 = vmatpush3.bf16.xpose.msra.mxu1 %v235_v10  ;;  %v486_v33 = vunpack.c.0.s8 %v478_v29  ;;  %v480_v35 = vsel %vm472_vm5, 16843009, %v1328_v27  ;;  %v487_v47 = vunpack.c.0.s8 %v479_v34  ;;  %vm473_vm9 = vnez %v465_v38  ;;  %v467_v56 = vld [vmem:[#allocation8 + $0xc] sm:$0x3]  ;;  %v468_v57 = vld [vmem:[#allocation8 + $0xe] sm:$0x3] }
  0x56   :  { %1072 = vmatprep.mubr.msk.bf16.mxu0 %vm1327_vm0, %v1326_v0  ;;  %1078 = vmatprep.mubr.msk.bf16.mxu1 %vm1327_vm0, %v1326_v0  ;;  %vm493_vm6 = vcmp.ne.s32.totalorder %v485_v32, 0  ;;  %v488_v48 = vunpack.c.0.s8 %v480_v35  ;;  %vm474_vm10 = vnez %v466_v39  ;;  %v481_v52 = vsel %vm473_vm9, 16843009, %v1328_v27  ;;  %v590_v35 = vld [vmem:[#allocation7] sm:$0xf]  ;;  %s996_s12 = sshll.u32 %s1329_s3, 4  ;;  %s997_s12 = int_to_ptr.vmem [resolvable:$true] %s996_s12 }
  0x57   :  { %1082 = vmatprep.subr.bf16.mxu0 %v1326_v0  ;;  %1088 = vmatprep.subr.bf16.mxu1 %v1326_v0  ;;  %vm494_vm7 = vcmp.ne.s32.totalorder %v486_v33, 0  ;;  %vm495_vm11 = vcmp.ne.s32.totalorder %v487_v47, 0  ;;  %v482_v53 = vsel %vm474_vm10, 16843009, %v1328_v27  ;;  %v489_v2 = vunpack.c.0.s8 %v481_v52  ;;  %v592_v52 = vld [vmem:[#allocation7 + $0x8] sm:$0xf]  ;;  %p1293_p5 = scmp.lt.s32.totalorder %s997_s12, %s997_s12 }
  0x58   :  { %vm496_vm12 = vcmp.ne.s32.totalorder %v488_v48, 0  ;;  %v490_v3 = vunpack.c.0.s8 %v482_v53  ;;  %vm475_vm13 = vnez %v467_v56  ;;  %vm476_vm14 = vnez %v468_v57  ;;  %s1288_s1 = scalar_lea.vmem %s997_s12, 1024 }
  0x59   :  { %vm497_vm15 = vcmp.ne.s32.totalorder %v489_v2, 0  ;;  %v483_v7 = vsel %vm475_vm13, 16843009, %v1328_v27  ;;  %v484_v8 = vsel %vm476_vm14, 16843009, %v1328_v27  ;;  %vm601_vm5 = vcmask 1043456   ;;  %p1289_p4 = scmp.ne.s32.totalorder %s997_s12, %s1288_s1  ;;  %p1294_p6 = scmp.lt.s32.totalorder %s1288_s1, %s1288_s1 }
  0x5a   :  { %vm498_vm2 = vcmp.ne.s32.totalorder %v490_v3, 0 }
  0x5b   :  { %p1295_p7 = por %p1294_p6, %p1293_p5 }
  0x5c   :  { %1073 = vmatmul.mubr.msk.bf16.vlgmr.msra.gmra.mrb[4].mxu0 %vm92_vm1, %v78_v13  ;;  %1079 = vmatmul.mubr.msk.bf16.vlgmr.msra.gmra.mrb[4].mxu1 %vm92_vm1, %v79_v14 }
  0x5d   :  { %1083 = vmatpush3.bf16.xpose.msra.mxu0 %v281_v15  ;;  %1089 = vmatpush3.bf16.xpose.msra.mxu1 %v327_v16  ;;  %p1296_p8 = pnand %p1295_p7, %p1289_p4 }
  0x5e   :  { %1084 = vmatprep.mubr.msk.bf16.mxu0 %vm1327_vm0, %v1326_v0  ;;  %1090 = vmatprep.mubr.msk.bf16.mxu1 %vm1327_vm0, %v1326_v0 }
  0x5f   :  { %1094 = vmatprep.subr.bf16.mxu0 %v1326_v0  ;;  %1100 = vmatprep.subr.bf16.mxu1 %v1326_v0 }
  0x64   :  { %1085 = vmatmul.mubr.msk.bf16.vlgmr.msra.gmra.mrb[8].mxu0 %vm92_vm1, %v80_v19  ;;  %1091 = vmatmul.mubr.msk.bf16.vlgmr.msra.gmra.mrb[8].mxu1 %vm92_vm1, %v81_v20  ;;  %v491_v19 = vunpack.c.0.s8 %v483_v7  ;;  %v492_v20 = vunpack.c.0.s8 %v484_v8 }
  0x65   :  { %1095 = vmatpush3.bf16.xpose.msra.mxu0 %v373_v21  ;;  %1101 = vmatpush3.bf16.xpose.msra.mxu1 %v419_v22 }
  0x66   :  { %1096 = vmatprep.mubr.msk.bf16.mxu0 %vm1327_vm0, %v1326_v0  ;;  %1102 = vmatprep.mubr.msk.bf16.mxu1 %vm1327_vm0, %v1326_v0  ;;  %vm499_vm3 = vcmp.ne.s32.totalorder %v491_v19, 0  ;;  %vm500_vm4 = vcmp.ne.s32.totalorder %v492_v20, 0  ;;  %v596_v20 = vld [vmem:[#allocation7 + $0x18] sm:$0xf] }
  0x67   :  { %1106 = vmatprep.subr.bf16.mxu0 %v1326_v0  ;;  %1112 = vmatprep.subr.bf16.mxu1 %v1326_v0 }
  0x6c   :  { %1097 = vmatmul.mubr.msk.bf16.vlgmr.msra.gmra.mrb[12].mxu0 %vm92_vm1, %v82_v23  ;;  %1103 = vmatmul.mubr.msk.bf16.vlgmr.msra.gmra.mrb[12].mxu1 %vm92_vm1, %v83_v24 }
  0x6d   :  { %1108 = vmatprep.mubr.msk.bf16.mxu0 %vm1327_vm0, %v1326_v0  ;;  %1114 = vmatprep.mubr.msk.bf16.mxu1 %vm1327_vm0, %v1326_v0 }
 0x127   :  { %v133_v36 = vpop.f32.mrb[0].mxu0  ;;  %v179_v37 = vpop.f32.mrb[0].mxu1 }
 0x128   :  { %v1474_v40 = vsel %vm493_vm6, -1e+09, %v133_v36  ;;  %v1062_v41 = vpop.f32.mrb[1].mxu0  ;;  %v1476_v42 = vsel %vm494_vm7, -1e+09, %v179_v37  ;;  %v1068_v43 = vpop.f32.mrb[1].mxu1 }
 0x129   :  { %v136_v44 = vpop.f32.mrb[2].mxu0  ;;  %v510_v45 = vsel %vm509_vm8, %v1474_v40, -inf  ;;  %v182_v46 = vpop.f32.mrb[2].mxu1  ;;  %v513_v51 = vsel %vm509_vm8, %v1476_v42, -inf  ;;  %v603_v36 = vsel %vm601_vm5, %v590_v35, 0 }
 0x12a   :  { %511 = vmax.xlane.f32.xlu0 %v510_v45  ;;  %v1063_v49 = vpop.f32.mrb[3].mxu0  ;;  %v1069_v50 = vpop.f32.mrb[3].mxu1  ;;  %1107 = vmatpush3.bf16.msra.mxu0 %v603_v36  ;;  %v591_v37 = vld [vmem:[#allocation7 + $0x4] sm:$0xf] }
 0x12b   :  { %1118 = vmatprep.subr.bf16.mxu0 %v1326_v0  ;;  %v649_v38 = vsel %vm601_vm5, %v591_v37, 0 }
 0x12c   :  { %1113 = vmatpush3.bf16.msra.mxu1 %v649_v38 }
 0x12d   :  { %1124 = vmatprep.subr.bf16.mxu1 %v1326_v0 }
 0x12e   :  { %514 = vmax.xlane.f32.xlu0 %v513_v51 }
 0x12f   :  { %v225_v54 = vpop.f32.mrb[4].mxu0  ;;  %v271_v55 = vpop.f32.mrb[4].mxu1 }
 0x130   :  { %v1482_v58 = vsel %vm495_vm11, -1e+09, %v225_v54  ;;  %v1074_v59 = vpop.f32.mrb[5].mxu0  ;;  %v1484_v60 = vsel %vm496_vm12, -1e+09, %v271_v55  ;;  %v1080_v61 = vpop.f32.mrb[5].mxu1 }
 0x131   :  { %v228_v62 = vpop.f32.mrb[6].mxu0  ;;  %v516_v63 = vsel %vm509_vm8, %v1482_v58, -inf  ;;  %v274_v1 = vpop.f32.mrb[6].mxu1  ;;  %v519_v6 = vsel %vm509_vm8, %v1484_v60, -inf  ;;  %v593_v61 = vld [vmem:[#allocation7 + $0xc] sm:$0xf] }
 0x132   :  { %517 = vmax.xlane.f32.xlu1 %v516_v63  ;;  %v1075_v4 = vpop.f32.mrb[7].mxu0  ;;  %v1081_v5 = vpop.f32.mrb[7].mxu1  ;;  %v741_v3 = vsel %vm601_vm5, %v593_v61, 0 }
 0x133   :  { %v594_v4 = vld [vmem:[#allocation7 + $0x10] sm:$0xf] }
 0x136   :  { %520 = vmax.xlane.f32.xlu1 %v519_v6 }
 0x137   :  { %v317_v9 = vpop.f32.mrb[8].mxu0  ;;  %v363_v10 = vpop.f32.mrb[8].mxu1 }
 0x138   :  { %v1490_v11 = vsel %vm497_vm15, -1e+09, %v317_v9  ;;  %v1492_v12 = vsel %vm498_vm2, -1e+09, %v363_v10  ;;  %v1092_v13 = vpop.f32.mrb[9].mxu1  ;;  %v1086_v14 = vpop.f32.mrb[9].mxu0 }
 0x139   :  { %v525_v15 = vsel %vm509_vm8, %v1492_v12, -inf  ;;  %v522_v16 = vsel %vm509_vm8, %v1490_v11, -inf  ;;  %v320_v17 = vpop.f32.mrb[10].mxu0  ;;  %v366_v18 = vpop.f32.mrb[10].mxu1  ;;  %v787_v10 = vsel %vm601_vm5, %v594_v4, 0 }
 0x13a   :  { %526 = vmax.xlane.f32.xlu1 %v525_v15  ;;  %523 = vmax.xlane.f32.xlu0 %v522_v16  ;;  %v1087_v21 = vpop.f32.mrb[11].mxu0  ;;  %v1093_v22 = vpop.f32.mrb[11].mxu1  ;;  %v595_v13 = vld [vmem:[#allocation7 + $0x14] sm:$0xf] }
 0x13b   :  { %v833_v19 = vsel %vm601_vm5, %v595_v13, 0 }
 0x13f   :  { %v409_v23 = vpop.f32.mrb[12].mxu0  ;;  %v455_v24 = vpop.f32.mrb[12].mxu1 }
 0x140   :  { %v1498_v25 = vsel %vm499_vm3, -1e+09, %v409_v23  ;;  %v1500_v26 = vsel %vm500_vm4, -1e+09, %v455_v24  ;;  %v1104_v27 = vpop.f32.mrb[13].mxu1  ;;  %v1098_v28 = vpop.f32.mrb[13].mxu0 }
 0x141   :  { %v531_v29 = vsel %vm509_vm8, %v1500_v26, -inf  ;;  %v528_v30 = vsel %vm509_vm8, %v1498_v25, -inf  ;;  %v412_v31 = vpop.f32.mrb[14].mxu0  ;;  %v458_v32 = vpop.f32.mrb[14].mxu1  ;;  %v597_v27 = vld [vmem:[#allocation7 + $0x1c] sm:$0xf] }
 0x142   :  { %532 = vmax.xlane.f32.xlu1 %v531_v29  ;;  %529 = vmax.xlane.f32.xlu0 %v528_v30  ;;  %v1099_v33 = vpop.f32.mrb[15].mxu0  ;;  %v1105_v34 = vpop.f32.mrb[15].mxu1  ;;  %v925_v29 = vsel %vm601_vm5, %v597_v27, 0 }
 0x1b7   :  { %v512_v39 = vpop.xlane.xlu0 %511 }
 0x1b8   :  { %v534_v41 = vsub.f32 %v1474_v40, %v512_v39 }
 0x1ba   :  { %v542_v43 = vmul.f32 1.442695, %v534_v41 }
 0x1bb   :  { %v515_v44 = vpop.xlane.xlu0 %514 }
 0x1bc   :  { %1168 = vpow2.f32 %v542_v43  ;;  %v535_v45 = vsub.f32 %v1476_v42, %v515_v44  ;;  %v695_v42 = vsel %vm601_vm5, %v592_v52, 0 }
 0x1be   :  { %v544_v46 = vmul.f32 1.442695, %v535_v45 }
 0x1bf   :  { %v518_v47 = vpop.xlane.xlu1 %517 }
 0x1c0   :  { %1170 = vpow2.f32 %v544_v46  ;;  %v536_v48 = vsub.f32 %v1482_v58, %v518_v47 }
 0x1c2   :  { %v546_v49 = vmul.f32 1.442695, %v536_v48 }
 0x1c3   :  { %v521_v50 = vpop.xlane.xlu1 %520 }
 0x1c4   :  { %1172 = vpow2.f32 %v546_v49  ;;  %v537_v51 = vsub.f32 %v1484_v60, %v521_v50 }
 0x1c6   :  { %v1169_v53 = vpop.eup %1168  ;;  %v548_v54 = vmul.f32 1.442695, %v537_v51 }
 0x1c7   :  { %v527_v55 = vpop.xlane.xlu1 %526  ;;  %v524_v40 = vpop.xlane.xlu0 %523  ;;  %v558_v56 = vsel %vm509_vm8, %v1169_v53, 0.0  ;;  %v582_v57 = vpack.c.bf16 %v1169_v53, %v1169_v53 }
 0x1c8   :  { %1174 = vpow2.f32 %v548_v54  ;;  %v539_v59 = vsub.f32 %v1492_v12, %v527_v55  ;;  %v538_v58 = vsub.f32 %v1490_v11, %v524_v40  ;;  %559 = vadd.xlane.f32.xlu0 %v558_v56 }
 0x1c9   :  { %1109 = vmatmul.mubr.msk.bf16.vlgmr.msra.gmra.mrb[16].mxu0 %vm509_vm8, %v582_v57 }
 0x1ca   :  { %v1171_v60 = vpop.eup %1170  ;;  %v552_v62 = vmul.f32 1.442695, %v539_v59  ;;  %v550_v63 = vmul.f32 1.442695, %v538_v58  ;;  %1119 = vmatpush3.bf16.msra.mxu0 %v695_v42  ;;  %1120 = vmatprep.mubr.msk.bf16.mxu0 %vm1327_vm0, %v1326_v0 }
 0x1cb   :  { %v561_v1 = vsel %vm509_vm8, %v1171_v60, 0.0  ;;  %v583_v2 = vpack.c.bf16 %v1171_v60, %v1171_v60  ;;  %1130 = vmatprep.subr.bf16.mxu0 %v1326_v0 }
 0x1cc   :  { %1176 = vpow2.f32 %v552_v62  ;;  %562 = vadd.xlane.f32.xlu1 %v561_v1 }
 0x1cd   :  { %1178 = vpow2.f32 %v550_v63  ;;  %1115 = vmatmul.mubr.msk.bf16.vlgmr.msra.gmra.mrb[16].mxu1 %vm509_vm8, %v583_v2 }
 0x1ce   :  { %v1173_v5 = vpop.eup %1172  ;;  %1125 = vmatpush3.bf16.msra.mxu1 %v741_v3  ;;  %1126 = vmatprep.mubr.msk.bf16.mxu1 %vm1327_vm0, %v1326_v0 }
 0x1cf   :  { %v533_v6 = vpop.xlane.xlu1 %532  ;;  %v530_v7 = vpop.xlane.xlu0 %529  ;;  %v564_v8 = vsel %vm509_vm8, %v1173_v5, 0.0  ;;  %v584_v9 = vpack.c.bf16 %v1173_v5, %v1173_v5  ;;  %1136 = vmatprep.subr.bf16.mxu1 %v1326_v0 }
 0x1d0   :  { %v541_v11 = vsub.f32 %v1500_v26, %v533_v6  ;;  %v540_v12 = vsub.f32 %v1498_v25, %v530_v7  ;;  %565 = vadd.xlane.f32.xlu0 %v564_v8  ;;  %v879_v26 = vsel %vm601_vm5, %v596_v20, 0 }
 0x1d1   :  { %1121 = vmatmul.mubr.msk.bf16.vlgmr.msra.gmra.mrb[20].mxu0 %vm509_vm8, %v584_v9 }
 0x1d2   :  { %v1175_v14 = vpop.eup %1174  ;;  %v556_v15 = vmul.f32 1.442695, %v541_v11  ;;  %v554_v16 = vmul.f32 1.442695, %v540_v12  ;;  %1131 = vmatpush3.bf16.msra.mxu0 %v787_v10  ;;  %1132 = vmatprep.mubr.msk.bf16.mxu0 %vm1327_vm0, %v1326_v0 }
 0x1d3   :  { %v567_v17 = vsel %vm509_vm8, %v1175_v14, 0.0  ;;  %v585_v18 = vpack.c.bf16 %v1175_v14, %v1175_v14  ;;  %1142 = vmatprep.subr.bf16.mxu0 %v1326_v0 }
 0x1d4   :  { %1180 = vpow2.f32 %v556_v15  ;;  %568 = vadd.xlane.f32.xlu1 %v567_v17 }
 0x1d5   :  { %1182 = vpow2.f32 %v554_v16  ;;  %1127 = vmatmul.mubr.msk.bf16.vlgmr.msra.gmra.mrb[20].mxu1 %vm509_vm8, %v585_v18 }
 0x1d6   :  { %v1177_v21 = vpop.eup %1176  ;;  %1137 = vmatpush3.bf16.msra.mxu1 %v833_v19  ;;  %1138 = vmatprep.mubr.msk.bf16.mxu1 %vm1327_vm0, %v1326_v0 }
 0x1d7   :  { %v1179_v22 = vpop.eup %1178  ;;  %v573_v23 = vsel %vm509_vm8, %v1177_v21, 0.0  ;;  %1148 = vmatprep.subr.bf16.mxu1 %v1326_v0  ;;  %v587_v28 = vpack.c.bf16 %v1177_v21, %v1177_v21 }
 0x1d8   :  { %574 = vadd.xlane.f32.xlu1 %v573_v23  ;;  %v570_v24 = vsel %vm509_vm8, %v1179_v22, 0.0  ;;  %v586_v25 = vpack.c.bf16 %v1179_v22, %v1179_v22 }
 0x1d9   :  { %571 = vadd.xlane.f32.xlu0 %v570_v24 }
 0x1da   :  { %1133 = vmatmul.mubr.msk.bf16.vlgmr.msra.gmra.mrb[24].mxu0 %vm509_vm8, %v586_v25 }
 0x1db   :  { %1143 = vmatpush3.bf16.msra.mxu0 %v879_v26  ;;  %1144 = vmatprep.mubr.msk.bf16.mxu0 %vm1327_vm0, %v1326_v0 }
 0x1dd   :  { %1139 = vmatmul.mubr.msk.bf16.vlgmr.msra.gmra.mrb[24].mxu1 %vm509_vm8, %v587_v28 }
 0x1de   :  { %v1181_v30 = vpop.eup %1180  ;;  %1149 = vmatpush3.bf16.msra.mxu1 %v925_v29  ;;  %1150 = vmatprep.mubr.msk.bf16.mxu1 %vm1327_vm0, %v1326_v0 }
 0x1df   :  { %v1183_v31 = vpop.eup %1182  ;;  %v579_v32 = vsel %vm509_vm8, %v1181_v30, 0.0  ;;  %v589_v35 = vpack.c.bf16 %v1181_v30, %v1181_v30 }
 0x1e0   :  { %580 = vadd.xlane.f32.xlu1 %v579_v32  ;;  %v576_v33 = vsel %vm509_vm8, %v1183_v31, 0.0  ;;  %v588_v34 = vpack.c.bf16 %v1183_v31, %v1183_v31 }
 0x1e1   :  { %577 = vadd.xlane.f32.xlu0 %v576_v33 }
 0x1e2   :  { %1145 = vmatmul.mubr.msk.bf16.vlgmr.msra.gmra.mrb[28].mxu0 %vm509_vm8, %v588_v34 }
 0x1e5   :  { %1151 = vmatmul.mubr.msk.bf16.vlgmr.msra.gmra.mrb[28].mxu1 %vm509_vm8, %v589_v35 }
 0x255   :  { %v560_v36 = vpop.xlane.xlu0 %559 }
 0x256   :  { %1184 = vrcp.f32 %v560_v36 }
 0x259   :  { %v563_v37 = vpop.xlane.xlu1 %562 }
 0x25a   :  { %1186 = vrcp.f32 %v563_v37 }
 0x25d   :  { %v566_v38 = vpop.xlane.xlu0 %565 }
 0x25e   :  { %1188 = vrcp.f32 %v566_v38 }
 0x260   :  { %v1185_v39 = vpop.eup %1184 }
 0x261   :  { %v569_v0 = vpop.xlane.xlu1 %568 }
 0x262   :  { %1190 = vrcp.f32 %v569_v0 }
 0x264   :  { %v1187_v47 = vpop.eup %1186 }
 0x265   :  { %v575_v53 = vpop.xlane.xlu1 %574 }
 0x266   :  { %v572_v48 = vpop.xlane.xlu0 %571 }
 0x267   :  { %1192 = vrcp.f32 %v572_v48 }
 0x268   :  { %v1189_v55 = vpop.eup %1188  ;;  %1194 = vrcp.f32 %v575_v53 }
 0x26c   :  { %v1191_v58 = vpop.eup %1190 }
 0x26d   :  { %v581_v2 = vpop.xlane.xlu1 %580 }
 0x26e   :  { %v578_v61 = vpop.xlane.xlu0 %577 }
 0x26f   :  { %1196 = vrcp.f32 %v578_v61 }
 0x270   :  { %1198 = vrcp.f32 %v581_v2 }
 0x271   :  { %v1193_v4 = vpop.eup %1192 }
 0x272   :  { %v1195_v9 = vpop.eup %1194 }
 0x279   :  { %v1197_v16 = vpop.eup %1196 }
 0x27a   :  { %v1199_v21 = vpop.eup %1198 }
 0x29c   :  { %v639_v41 = vpop.f32.mrb[16].mxu0 }
 0x29d   :  { %v975_v43 = vmul.f32 %v1185_v39, %v639_v41  ;;  %v1110_v44 = vpop.f32.mrb[17].mxu0 }
 0x29e   :  { %v642_v45 = vpop.f32.mrb[18].mxu0 }
 0x29f   :  { %983 = vst.msk [vmem:[#allocation10] sm:$0xff] %vm92_vm1, %v975_v43  ;;  %v1111_v46 = vpop.f32.mrb[19].mxu0 }
 0x2a0   :  { %v685_v49 = vpop.f32.mrb[16].mxu1 }
 0x2a1   :  { %v976_v50 = vmul.f32 %v1187_v47, %v685_v49  ;;  %v1116_v51 = vpop.f32.mrb[17].mxu1 }
 0x2a2   :  { %v688_v52 = vpop.f32.mrb[18].mxu1 }
 0x2a3   :  { %984 = vst.msk [vmem:[#allocation10 + $0x8] sm:$0xff] %vm92_vm1, %v976_v50  ;;  %v1117_v54 = vpop.f32.mrb[19].mxu1 }
 0x2a4   :  { %v731_v40 = vpop.f32.mrb[20].mxu0 }
 0x2a5   :  { %v977_v56 = vmul.f32 %v1189_v55, %v731_v40  ;;  %v1122_v57 = vpop.f32.mrb[21].mxu0 }
 0x2a6   :  { %v734_v42 = vpop.f32.mrb[22].mxu0 }
 0x2a7   :  { %985 = vst.msk [vmem:[#allocation10 + $0x10] sm:$0xff] %vm92_vm1, %v977_v56  ;;  %v1123_v59 = vpop.f32.mrb[23].mxu0 }
 0x2a8   :  { %v777_v60 = vpop.f32.mrb[20].mxu1 }
 0x2a9   :  { %v978_v62 = vmul.f32 %v1191_v58, %v777_v60  ;;  %v1128_v63 = vpop.f32.mrb[21].mxu1 }
 0x2aa   :  { %v780_v1 = vpop.f32.mrb[22].mxu1 }
 0x2ab   :  { %986 = vst.msk [vmem:[#allocation10 + $0x18] sm:$0xff] %vm92_vm1, %v978_v62  ;;  %v1129_v3 = vpop.f32.mrb[23].mxu1 }
 0x2ad   :  { %v823_v5 = vpop.f32.mrb[24].mxu0 }
 0x2ae   :  { %v979_v6 = vmul.f32 %v1193_v4, %v823_v5  ;;  %v1134_v7 = vpop.f32.mrb[25].mxu0 }
 0x2af   :  { %v826_v8 = vpop.f32.mrb[26].mxu0 }
 0x2b0   :  { %987 = vst.msk [vmem:[#allocation10 + $0x20] sm:$0xff] %vm92_vm1, %v979_v6  ;;  %v1135_v10 = vpop.f32.mrb[27].mxu0  ;;  %v869_v11 = vpop.f32.mrb[24].mxu1 }
 0x2b1   :  { %v980_v12 = vmul.f32 %v1195_v9, %v869_v11  ;;  %v1140_v13 = vpop.f32.mrb[25].mxu1 }
 0x2b2   :  { %v872_v14 = vpop.f32.mrb[26].mxu1 }
 0x2b3   :  { %988 = vst.msk [vmem:[#allocation10 + $0x28] sm:$0xff] %vm92_vm1, %v980_v12  ;;  %v1141_v15 = vpop.f32.mrb[27].mxu1 }
 0x2b5   :  { %v915_v17 = vpop.f32.mrb[28].mxu0 }
 0x2b6   :  { %v981_v18 = vmul.f32 %v1197_v16, %v915_v17  ;;  %v1146_v19 = vpop.f32.mrb[29].mxu0 }
 0x2b7   :  { %v918_v20 = vpop.f32.mrb[30].mxu0 }
 0x2b8   :  { %989 = vst.msk [vmem:[#allocation10 + $0x30] sm:$0xff] %vm92_vm1, %v981_v18  ;;  %v1147_v22 = vpop.f32.mrb[31].mxu0  ;;  %v961_v23 = vpop.f32.mrb[28].mxu1 }
 0x2b9   :  { %v982_v24 = vmul.f32 %v1199_v21, %v961_v23  ;;  %v1152_v25 = vpop.f32.mrb[29].mxu1 }
 0x2ba   :  { %v964_v26 = vpop.f32.mrb[30].mxu1 }
 0x2bb   :  { %990 = vst.msk [vmem:[#allocation10 + $0x38] sm:$0xff] %vm92_vm1, %v982_v24  ;;  %v1153_v27 = vpop.f32.mrb[31].mxu1 }
 0x2bc   :  { %1299 = shalt.err (!%p1296_p8)
}
 0x2bd   :  { %s1300_s15 = scalar_lea.hbm %s1580_s4, 1024 }
 0x2be   :  { %p1301_p9 = scmp.ne.s32.totalorder %s1580_s4, %s1300_s15  ;;  %p1304_p10 = scmp.lt.u32.totalorder %s1300_s15, %s1580_s4 }
 0x2c0   :  { %p1306_p11 = pnand %p1304_p10, %p1301_p9 }
 0x2c2   :  { %1309 = shalt.err (!%p1306_p11)
}
 0x2c3   :  { %s1330_s21 = smov 128   ;;  %s1331_s22 = smov 8  }
 0x2c4   :  { %1002 = dma.vmem_to_hbm [thread:$0]  %s997_s12, 1024, %s1580_s4, [#allocation4], %s1330_s21, %s1330_s21, %s1331_s22  }
 0x2c5   :  { %1316 = dma.done.wait [#allocation4], 1024  }
 0x2c6   :  { %1317 = vsyncadd [#allocation4], 4294966272 }
 0x2c7   :  { %1006 = vsyncpa [#allocation3], 1 }
 0x2c8   :  { %1007 = vsyncpa [#allocation6], 1 }
 0x2c9   :  { %1008 = vsyncpa [#allocation9], 1 }
 0x2ca   :  { %1009 = vsyncpa [#allocation4], 1 }

</bundles_post_ra>
